<compile_context>
chip_gen: v5e
topology: v5e:2x2
jax: 0.10.0
libtpu: 0.0.40
codegen_flags: <defaults>
</compile_context>

<pallas_src>
import functools

import numpy as np
import jax
import jax.numpy as jnp
from jax.experimental import pallas as pl
from jax.experimental.pallas import tpu as pltpu

VMEM = pltpu.MemorySpace.VMEM
LANES = 128


# ----------------------------- slab packing helpers -----------------------------

def _pad8(n):
    return ((n + 7) // 8) * 8


class SlabBuilder:
    """Packs many small 2D operands into one contiguous, (8,128)-aligned f32
    slab; the kernel carves them back out with static slices (zero cost)."""

    def __init__(self, lanes=LANES):
        self.lanes = lanes
        self.blocks = []
        self.meta = {}
        self.rows = 0

    def add(self, name, arr):
        arr = jnp.asarray(arr, jnp.float32)
        r, c = arr.shape
        assert c <= self.lanes, f"{name}: {c} > {self.lanes} lanes"
        self.meta[name] = (self.rows, r, c)
        padded = jnp.pad(arr, ((0, _pad8(r) - r), (0, self.lanes - c)))
        self.blocks.append(padded)
        self.rows += _pad8(r)

    def build(self):
        return jnp.concatenate(self.blocks, axis=0), dict(self.meta)


# ----------------------------- fused Pallas kernel -----------------------------

def _graphnet_fused_kernel(data_ref, par_ref, out_ref, *,
                           depth, dmeta, pmeta, gn_eps, pst, vst, nv, npg):
    def dget(name):
        off, r, c = dmeta[name]
        return data_ref[off:off + r, 0:c]

    def pget(name):
        off, r, c = pmeta[name]
        return par_ref[off:off + r, 0:c]

    def mm(a, b):
        return jnp.dot(a, b, preferred_element_type=jnp.float32)

    x0 = dget("x")                       # [NT, C]
    adj_eff = dget("adj_eff")            # [NT, NT]  (self-loop + (1+eps) folded in)
    pos_mean = dget("pos_mean")          # [NPG, NT] group-mean over graphs
    pos_scat = dget("pos_scat")          # [NT, NPG] position one-hot scatter
    gsel = dget("gsel")                  # [B_pad, NT] 0/1 graph membership
    place_pi = dget("place_pi")          # [NPG, 128] lane placement
    place_v = dget("place_v")            # [NV, 128]  lane placement

    # --- GNNLayer: GIN stack (eval BatchNorm folded into weights), jk='cat' ---
    # TODO(synk): PyG's exact GIN/BasicGNN norm plumbing is approximated by
    #             eval-mode BatchNorm (fresh running stats -> affine, folded here).
    h = x0
    jk_acc = None
    for i in range(depth):
        g = mm(adj_eff, h)                                   # (1+eps)*h + sum_j h_j
        t = jnp.maximum(mm(g, pget(f"w1_{i}")) + pget(f"b1_{i}"), 0.0)
        h = jnp.maximum(mm(t, pget(f"w2_{i}")) + pget(f"b2_{i}"), 0.0)
        c = mm(h, pget(f"jkw_{i}"))                          # this layer's jk row-block
        jk_acc = c if jk_acc is None else jk_acc + c
    jk_out = jk_acc + pget("jk_b")

    # --- CatLayers([x, gnn]) -> Linear -> ReLU (concat folded into split weights) ---
    z = mm(x0, pget("lin1_wx")) + mm(jk_out, pget("lin1_wh")) + pget("lin1_b")
    z = jnp.maximum(z, 0.0)

    # --- GraphNorm over the graphs axis of the [B, N//B, F] view ---
    # (stats over dim 0 of the 3D view; expressed as constant matmuls to keep
    #  the kernel 2D / layout-safe, no in-kernel reshapes.)
    mean_full = mm(pos_scat, mm(pos_mean, z))
    out = z - mean_full * pget("gn_ms")
    var_full = mm(pos_scat, mm(pos_mean, out * out))
    z = pget("gn_w") * out * jax.lax.rsqrt(var_full + gn_eps) + pget("gn_b")

    # --- lin2 folded into both Identity-MLP heads: one GEMM -> [NT, NV+1] ---
    hz = mm(z, pget("head_w")) + pget("head_b")
    v_nodes = hz[:, 0:nv]                                    # [NT, NV]
    p_nodes = hz[:, nv:nv + 1]                               # [NT, 1]

    # --- value head: per-graph mean pool, log_softmax(v/vst) ---
    v = mm(gsel, v_nodes) * (1.0 / npg)                      # [B_pad, NV]
    vz = v * (1.0 / vst)
    vmax = jnp.max(vz, axis=1, keepdims=True)
    vls = vz - (jnp.log(jnp.sum(jnp.exp(vz - vmax), axis=1, keepdims=True)) + vmax)

    # --- policy head: regroup [NT,1] -> [B_pad, NPG], log_softmax(pi/pst) ---
    p = mm(gsel, p_nodes * pos_scat)                         # [B_pad, NPG]
    pz = p * (1.0 / pst)
    pmax = jnp.max(pz, axis=1, keepdims=True)
    pls = pz - (jnp.log(jnp.sum(jnp.exp(pz - pmax), axis=1, keepdims=True)) + pmax)

    # --- single lane-dense [B_pad, 128] output (one unmasked full-tile store) ---
    out_ref[...] = mm(pls, place_pi) + mm(vls, place_v)


# ----------------------------- parameter prep (plain JAX, done once) -----------------------------

def prepare_fused_params(params, channels):
    """Fold eval-BatchNorm affines into GIN weights, fold the Identity-MLP head
    pairs AND lin2 into a single combined head matmul, split concat-facing
    weights, and pack everything into one (8,128)-aligned slab. Exact, one-time."""
    sb = SlabBuilder()
    h = params["gin_layers"][0]["w2"].shape[1]
    for i, lp in enumerate(params["gin_layers"]):
        sb.add(f"w1_{i}", lp["w1"] * lp["s1"])
        sb.add(f"b1_{i}", lp["b1"] * lp["s1"] + lp["t1"])
        sb.add(f"w2_{i}", lp["w2"] * lp["s2"])
        sb.add(f"b2_{i}", lp["b2"] * lp["s2"] + lp["t2"])
        sb.add(f"jkw_{i}", params["jk_w"][i * h:(i + 1) * h, :])
    sb.add("jk_b", params["jk_b"])
    sb.add("lin1_wx", params["lin1_w"][:channels, :])
    sb.add("lin1_wh", params["lin1_w"][channels:, :])
    sb.add("lin1_b", params["lin1_b"])
    sb.add("gn_w", params["gn_w"])
    sb.add("gn_b", params["gn_b"])
    sb.add("gn_ms", params["gn_ms"])
    # Identity-MLP heads folded to single matmuls, then lin2 folded in (all-linear).
    v_w = params["v1_w"] @ params["v2_w"]
    v_b = params["v1_b"] @ params["v2_w"] + params["v2_b"]
    p_w = params["p1_w"] @ params["p2_w"]
    p_b = params["p1_b"] @ params["p2_w"] + params["p2_b"]
    vp_w = jnp.concatenate([v_w, p_w], axis=1)               # [PHEAD, NV+1]
    vp_b = jnp.concatenate([v_b, p_b], axis=1)               # [1, NV+1]
    sb.add("head_w", params["lin2_w"] @ vp_w)                # [MIDDLE, NV+1]
    sb.add("head_b", params["lin2_b"] @ vp_w + vp_b)         # [1, NV+1]
    return sb.build()


def prepare_graph_slab(x_nodes, adj, batch_size, nv, *, gin_eps=0.0, lanes=LANES):
    """Pack per-call graph data (features, effective adjacency, GraphNorm
    group matrices, graph selector, output lane-placement) into one slab."""
    nt = x_nodes.shape[0]
    npg = nt // batch_size
    b_pad = _pad8(batch_size)

    adj_eff = jnp.asarray(adj, jnp.float32) + (1.0 + gin_eps) * jnp.eye(nt, dtype=jnp.float32)

    pos_mean = np.zeros((npg, nt), np.float32)
    pos_scat = np.zeros((nt, npg), np.float32)
    for j in range(nt):
        pos_mean[j % npg, j] = 1.0 / batch_size
        pos_scat[j, j % npg] = 1.0

    # 0/1 graph membership selector, rows padded to a full sublane tile
    # (padding rows are zero -> harmless log_softmax of zeros, sliced off later).
    gsel = np.zeros((b_pad, nt), np.float32)
    for b in range(batch_size):
        gsel[b, b * npg:(b + 1) * npg] = 1.0

    place_pi = np.zeros((npg, lanes), np.float32)
    place_pi[np.arange(npg), np.arange(npg)] = 1.0
    place_v = np.zeros((nv, lanes), np.float32)
    place_v[np.arange(nv), npg + np.arange(nv)] = 1.0

    sb = SlabBuilder(lanes)
    sb.add("x", x_nodes)
    sb.add("adj_eff", adj_eff)
    sb.add("pos_mean", pos_mean)
    sb.add("pos_scat", pos_scat)
    sb.add("gsel", gsel)
    sb.add("place_pi", place_pi)
    sb.add("place_v", place_v)
    return sb.build()


# ----------------------------- forward pass (single pallas_call) -----------------------------

def graphnet_forward(data_slab, dmeta, param_slab, pmeta, *,
                     depth, batch_size, npg, nv, pst, vst, gn_eps=1e-5):
    b_pad = _pad8(batch_size)
    kern = functools.partial(_graphnet_fused_kernel, depth=depth, dmeta=dmeta,
                             pmeta=pmeta, gn_eps=gn_eps, pst=pst, vst=vst,
                             nv=nv, npg=npg)
    out = pl.pallas_call(
        kern,
        out_shape=jax.ShapeDtypeStruct((b_pad, LANES), jnp.float32),
        in_specs=[pl.BlockSpec(memory_space=VMEM),
                  pl.BlockSpec(memory_space=VMEM)],
        out_specs=pl.BlockSpec(memory_space=VMEM),
    )(data_slab, param_slab)
    log_pi = out[:batch_size, :npg]
    log_v = out[:batch_size, npg:npg + nv]
    return log_pi, log_v


# ----------------------------- parameters -----------------------------

def init_params(key, c, h, depth, middle, phead, vdense, pdense, nv):
    def dense(k, fi, fo):
        kw, kb = jax.random.split(k)
        bound = 1.0 / np.sqrt(fi)
        w = jax.random.uniform(kw, (fi, fo), jnp.float32, -bound, bound)
        b = jax.random.uniform(kb, (1, fo), jnp.float32, -bound, bound)
        return w, b

    # BatchNorm in eval mode with fresh running stats (mean=0, var=1, gamma=1, beta=0)
    bn_scale = jnp.full((1, h), 1.0 / np.sqrt(1.0 + 1e-5), jnp.float32)
    bn_shift = jnp.zeros((1, h), jnp.float32)

    keys = jax.random.split(key, 16)
    params = {}
    gin_layers = []
    in_dim = c
    for i in range(depth):
        k1, k2 = jax.random.split(keys[i], 2)
        w1, b1 = dense(k1, in_dim, h)
        w2, b2 = dense(k2, h, h)
        gin_layers.append(dict(w1=w1, b1=b1, s1=bn_scale, t1=bn_shift,
                               w2=w2, b2=b2, s2=bn_scale, t2=bn_shift))
        in_dim = h
    params["gin_layers"] = gin_layers
    # BasicGNN final projection for jk='cat': Linear(depth*H -> depth*H)
    params["jk_w"], params["jk_b"] = dense(keys[depth], depth * h, depth * h)
    # LinearLayer mlp: Linear(C + depth*H -> middle) -> ReLU -> GraphNorm -> Linear(middle -> phead)
    f_in = c + depth * h
    params["lin1_w"], params["lin1_b"] = dense(keys[depth + 1], f_in, middle)
    params["gn_w"] = jnp.ones((1, middle), jnp.float32)
    params["gn_b"] = jnp.zeros((1, middle), jnp.float32)
    params["gn_ms"] = jnp.ones((1, middle), jnp.float32)
    params["lin2_w"], params["lin2_b"] = dense(keys[depth + 2], middle, phead)
    # v_fc mlp (Identity activations): Linear(phead -> vdense) -> Linear(vdense -> nv)
    params["v1_w"], params["v1_b"] = dense(keys[depth + 3], phead, vdense)
    params["v2_w"], params["v2_b"] = dense(keys[depth + 4], vdense, nv)
    # pi_fc mlp (Identity activations): Linear(phead -> pdense) -> Linear(pdense -> 1)
    params["p1_w"], params["p1_b"] = dense(keys[depth + 5], phead, pdense)
    params["p2_w"], params["p2_b"] = dense(keys[depth + 6], pdense, 1)
    return params


# ----------------------------- pure-JAX reference (original, unfolded math) -----------------------------

def reference_forward(x_nodes, adj, pool_mat, params, batch_size, *, pst, vst):
    h = x_nodes
    xs = []
    for lp in params["gin_layers"]:
        g = h + adj @ h
        g = jnp.maximum((g @ lp["w1"] + lp["b1"]) * lp["s1"] + lp["t1"], 0.0)
        g = (g @ lp["w2"] + lp["b2"]) * lp["s2"] + lp["t2"]
        h = jnp.maximum(g, 0.0)
        xs.append(h)
    h = jnp.concatenate(xs, axis=1) @ params["jk_w"] + params["jk_b"]
    x = jnp.concatenate([x_nodes, h], axis=1)
    nt = x.shape[0]
    npg = nt // batch_size
    x = jnp.maximum(x @ params["lin1_w"] + params["lin1_b"], 0.0)
    x3 = x.reshape(batch_size, npg, -1)
    mean = jnp.mean(x3, axis=0, keepdims=True)
    out = x3 - mean * params["gn_ms"]
    var = jnp.mean(out * out, axis=0, keepdims=True)
    x3 = params["gn_w"] * out / jnp.sqrt(var + 1e-5) + params["gn_b"]
    x = x3.reshape(nt, -1) @ params["lin2_w"] + params["lin2_b"]
    v = (x @ params["v1_w"] + params["v1_b"]) @ params["v2_w"] + params["v2_b"]
    v = pool_mat @ v
    pi = (x @ params["p1_w"] + params["p1_b"]) @ params["p2_w"] + params["p2_b"]
    pi = pi.reshape(batch_size, npg)
    return jax.nn.log_softmax(pi / pst, axis=1), jax.nn.log_softmax(v / vst, axis=1)


if __name__ == "__main__":
    B, NPG = 2, 8                 # batch of 2 graphs, 8 nodes per graph
    NT = B * NPG                  # total nodes
    C = 4                         # game_cls.observation_size()[0]
    H = 32                        # args.num_channels
    DEPTH = 2                     # args.depth
    MIDDLE = 32                   # args.middle_layers = [32]
    PHEAD = 16                    # args.policy_head_channels == args.value_head_channels
    VDENSE = 16                   # args.value_dense_layers = [16]
    PDENSE = 16                   # args.policy_dense_layers = [16]
    NV = 3                        # num_players(2) + has_draw(1)
    PST, VST = 1.1, 1.4           # policy / value softmax temperatures

    key = jax.random.PRNGKey(0)
    kx, kp = jax.random.split(key)
    x_nodes = jax.random.normal(kx, (NT, C), jnp.float32)

    # deterministic block-diagonal ring graphs (symmetric -> both edge directions),
    # standing in for data.edge_index
    adj_np = np.zeros((NT, NT), np.float32)
    for b in range(B):
        for i in range(NPG):
            u = b * NPG + i
            v = b * NPG + (i + 1) % NPG
            adj_np[u, v] = 1.0
            adj_np[v, u] = 1.0
    adj = jnp.asarray(adj_np)

    params = init_params(kp, C, H, DEPTH, MIDDLE, PHEAD, VDENSE, PDENSE, NV)
    param_slab, pmeta = prepare_fused_params(params, C)
    data_slab, dmeta = prepare_graph_slab(x_nodes, adj, B, NV, gin_eps=0.0)

    log_pi, log_v = graphnet_forward(data_slab, dmeta, param_slab, pmeta,
                                     depth=DEPTH, batch_size=B, npg=NPG, nv=NV,
                                     pst=PST, vst=VST)
    jax.block_until_ready((log_pi, log_v))

    # per-graph mean pooling matrix for the reference
    pool_np = np.zeros((B, NT), np.float32)
    for b in range(B):
        pool_np[b, b * NPG:(b + 1) * NPG] = 1.0 / NPG
    ref_pi, ref_v = reference_forward(x_nodes, adj, jnp.asarray(pool_np), params, B,
                                      pst=PST, vst=VST)

    assert log_pi.shape == (B, NPG) and log_v.shape == (B, NV)
    assert jnp.allclose(log_pi, ref_pi, atol=1e-4, rtol=1e-4)
    assert jnp.allclose(log_v, ref_v, atol=1e-4, rtol=1e-4)
    print("KERNEL_OK")
</pallas_src>

<mosaic_0001>
module attributes {stable_mosaic.version = 11 : i64} {
  func.func @_graphnet_fused_kernel(%arg0: memref<80x128xf32, #tpu.memory_space<vmem>>, %arg1: memref<352x128xf32, #tpu.memory_space<vmem>>, %arg2: memref<8x128xf32, #tpu.memory_space<vmem>>) attributes {dimension_semantics = [], scalar_prefetch = 0 : i64, scratch_operands = 0 : i64, tpu.core_type = #tpu.core_type<tc>} {
    %c0 = arith.constant 0 : index
    %c0_0 = arith.constant 0 : index
    %0 = vector.load %arg0[%c0, %c0_0] : memref<80x128xf32, #tpu.memory_space<vmem>>, vector<16x4xf32>
    %c16 = arith.constant 16 : index
    %c0_1 = arith.constant 0 : index
    %1 = vector.load %arg0[%c16, %c0_1] : memref<80x128xf32, #tpu.memory_space<vmem>>, vector<16x16xf32>
    %c32 = arith.constant 32 : index
    %c0_2 = arith.constant 0 : index
    %2 = vector.load %arg0[%c32, %c0_2] : memref<80x128xf32, #tpu.memory_space<vmem>>, vector<8x16xf32>
    %c40 = arith.constant 40 : index
    %c0_3 = arith.constant 0 : index
    %3 = vector.load %arg0[%c40, %c0_3] : memref<80x128xf32, #tpu.memory_space<vmem>>, vector<16x8xf32>
    %c56 = arith.constant 56 : index
    %c0_4 = arith.constant 0 : index
    %4 = vector.load %arg0[%c56, %c0_4] : memref<80x128xf32, #tpu.memory_space<vmem>>, vector<8x16xf32>
    %c64 = arith.constant 64 : index
    %c0_5 = arith.constant 0 : index
    %5 = vector.load %arg0[%c64, %c0_5] : memref<80x128xf32, #tpu.memory_space<vmem>>, vector<8x128xf32>
    %c72 = arith.constant 72 : index
    %c0_6 = arith.constant 0 : index
    %6 = vector.load %arg0[%c72, %c0_6] : memref<80x128xf32, #tpu.memory_space<vmem>>, vector<3x128xf32>
    %cst = arith.constant dense<0.000000e+00> : vector<16x4xf32>
    %7 = tpu.matmul %1, %0, %cst {dimension_numbers = #tpu.dot_dimension_numbers<[1], [0], [0], [1], [0, 0, 1, 1], [], []>} : vector<16x16xf32>, vector<16x4xf32>, vector<16x4xf32> -> vector<16x4xf32>
    %c0_7 = arith.constant 0 : index
    %c0_8 = arith.constant 0 : index
    %8 = vector.load %arg1[%c0_7, %c0_8] : memref<352x128xf32, #tpu.memory_space<vmem>>, vector<4x32xf32>
    %cst_9 = arith.constant dense<0.000000e+00> : vector<16x32xf32>
    %9 = tpu.matmul %7, %8, %cst_9 {dimension_numbers = #tpu.dot_dimension_numbers<[1], [0], [0], [1], [0, 0, 1, 1], [], []>} : vector<16x4xf32>, vector<4x32xf32>, vector<16x32xf32> -> vector<16x32xf32>
    %c8 = arith.constant 8 : index
    %c0_10 = arith.constant 0 : index
    %10 = vector.load %arg1[%c8, %c0_10] : memref<352x128xf32, #tpu.memory_space<vmem>>, vector<1x32xf32>
    %11 = vector.broadcast %10 : vector<1x32xf32> to vector<16x32xf32>
    %12 = arith.addf %9, %11 : vector<16x32xf32>
    %cst_11 = arith.constant 0.000000e+00 : f32
    %13 = vector.broadcast %cst_11 : f32 to vector<16x32xf32>
    %14 = arith.maximumf %12, %13 : vector<16x32xf32>
    %c16_12 = arith.constant 16 : index
    %c0_13 = arith.constant 0 : index
    %15 = vector.load %arg1[%c16_12, %c0_13] : memref<352x128xf32, #tpu.memory_space<vmem>>, vector<32x32xf32>
    %cst_14 = arith.constant dense<0.000000e+00> : vector<16x32xf32>
    %16 = tpu.matmul %14, %15, %cst_14 {dimension_numbers = #tpu.dot_dimension_numbers<[1], [0], [0], [1], [0, 0, 1, 1], [], []>} : vector<16x32xf32>, vector<32x32xf32>, vector<16x32xf32> -> vector<16x32xf32>
    %c48 = arith.constant 48 : index
    %c0_15 = arith.constant 0 : index
    %17 = vector.load %arg1[%c48, %c0_15] : memref<352x128xf32, #tpu.memory_space<vmem>>, vector<1x32xf32>
    %18 = vector.broadcast %17 : vector<1x32xf32> to vector<16x32xf32>
    %19 = arith.addf %16, %18 : vector<16x32xf32>
    %cst_16 = arith.constant 0.000000e+00 : f32
    %20 = vector.broadcast %cst_16 : f32 to vector<16x32xf32>
    %21 = arith.maximumf %19, %20 : vector<16x32xf32>
    %c56_17 = arith.constant 56 : index
    %c0_18 = arith.constant 0 : index
    %22 = vector.load %arg1[%c56_17, %c0_18] : memref<352x128xf32, #tpu.memory_space<vmem>>, vector<32x64xf32>
    %cst_19 = arith.constant dense<0.000000e+00> : vector<16x64xf32>
    %23 = tpu.matmul %21, %22, %cst_19 {dimension_numbers = #tpu.dot_dimension_numbers<[1], [0], [0], [1], [0, 0, 1, 1], [], []>} : vector<16x32xf32>, vector<32x64xf32>, vector<16x64xf32> -> vector<16x64xf32>
    %cst_20 = arith.constant dense<0.000000e+00> : vector<16x32xf32>
    %24 = tpu.matmul %1, %21, %cst_20 {dimension_numbers = #tpu.dot_dimension_numbers<[1], [0], [0], [1], [0, 0, 1, 1], [], []>} : vector<16x16xf32>, vector<16x32xf32>, vector<16x32xf32> -> vector<16x32xf32>
    %c88 = arith.constant 88 : index
    %c0_21 = arith.constant 0 : index
    %25 = vector.load %arg1[%c88, %c0_21] : memref<352x128xf32, #tpu.memory_space<vmem>>, vector<32x32xf32>
    %cst_22 = arith.constant dense<0.000000e+00> : vector<16x32xf32>
    %26 = tpu.matmul %24, %25, %cst_22 {dimension_numbers = #tpu.dot_dimension_numbers<[1], [0], [0], [1], [0, 0, 1, 1], [], []>} : vector<16x32xf32>, vector<32x32xf32>, vector<16x32xf32> -> vector<16x32xf32>
    %c120 = arith.constant 120 : index
    %c0_23 = arith.constant 0 : index
    %27 = vector.load %arg1[%c120, %c0_23] : memref<352x128xf32, #tpu.memory_space<vmem>>, vector<1x32xf32>
    %28 = vector.broadcast %27 : vector<1x32xf32> to vector<16x32xf32>
    %29 = arith.addf %26, %28 : vector<16x32xf32>
    %cst_24 = arith.constant 0.000000e+00 : f32
    %30 = vector.broadcast %cst_24 : f32 to vector<16x32xf32>
    %31 = arith.maximumf %29, %30 : vector<16x32xf32>
    %c128 = arith.constant 128 : index
    %c0_25 = arith.constant 0 : index
    %32 = vector.load %arg1[%c128, %c0_25] : memref<352x128xf32, #tpu.memory_space<vmem>>, vector<32x32xf32>
    %cst_26 = arith.constant dense<0.000000e+00> : vector<16x32xf32>
    %33 = tpu.matmul %31, %32, %cst_26 {dimension_numbers = #tpu.dot_dimension_numbers<[1], [0], [0], [1], [0, 0, 1, 1], [], []>} : vector<16x32xf32>, vector<32x32xf32>, vector<16x32xf32> -> vector<16x32xf32>
    %c160 = arith.constant 160 : index
    %c0_27 = arith.constant 0 : index
    %34 = vector.load %arg1[%c160, %c0_27] : memref<352x128xf32, #tpu.memory_space<vmem>>, vector<1x32xf32>
    %35 = vector.broadcast %34 : vector<1x32xf32> to vector<16x32xf32>
    %36 = arith.addf %33, %35 : vector<16x32xf32>
    %cst_28 = arith.constant 0.000000e+00 : f32
    %37 = vector.broadcast %cst_28 : f32 to vector<16x32xf32>
    %38 = arith.maximumf %36, %37 : vector<16x32xf32>
    %c168 = arith.constant 168 : index
    %c0_29 = arith.constant 0 : index
    %39 = vector.load %arg1[%c168, %c0_29] : memref<352x128xf32, #tpu.memory_space<vmem>>, vector<32x64xf32>
    %cst_30 = arith.constant dense<0.000000e+00> : vector<16x64xf32>
    %40 = tpu.matmul %38, %39, %cst_30 {dimension_numbers = #tpu.dot_dimension_numbers<[1], [0], [0], [1], [0, 0, 1, 1], [], []>} : vector<16x32xf32>, vector<32x64xf32>, vector<16x64xf32> -> vector<16x64xf32>
    %41 = arith.addf %23, %40 : vector<16x64xf32>
    %c200 = arith.constant 200 : index
    %c0_31 = arith.constant 0 : index
    %42 = vector.load %arg1[%c200, %c0_31] : memref<352x128xf32, #tpu.memory_space<vmem>>, vector<1x64xf32>
    %43 = vector.broadcast %42 : vector<1x64xf32> to vector<16x64xf32>
    %44 = arith.addf %41, %43 : vector<16x64xf32>
    %c208 = arith.constant 208 : index
    %c0_32 = arith.constant 0 : index
    %45 = vector.load %arg1[%c208, %c0_32] : memref<352x128xf32, #tpu.memory_space<vmem>>, vector<4x32xf32>
    %cst_33 = arith.constant dense<0.000000e+00> : vector<16x32xf32>
    %46 = tpu.matmul %0, %45, %cst_33 {dimension_numbers = #tpu.dot_dimension_numbers<[1], [0], [0], [1], [0, 0, 1, 1], [], []>} : vector<16x4xf32>, vector<4x32xf32>, vector<16x32xf32> -> vector<16x32xf32>
    %c216 = arith.constant 216 : index
    %c0_34 = arith.constant 0 : index
    %47 = vector.load %arg1[%c216, %c0_34] : memref<352x128xf32, #tpu.memory_space<vmem>>, vector<64x32xf32>
    %cst_35 = arith.constant dense<0.000000e+00> : vector<16x32xf32>
    %48 = tpu.matmul %44, %47, %cst_35 {dimension_numbers = #tpu.dot_dimension_numbers<[1], [0], [0], [1], [0, 0, 1, 1], [], []>} : vector<16x64xf32>, vector<64x32xf32>, vector<16x32xf32> -> vector<16x32xf32>
    %49 = arith.addf %46, %48 : vector<16x32xf32>
    %c280 = arith.constant 280 : index
    %c0_36 = arith.constant 0 : index
    %50 = vector.load %arg1[%c280, %c0_36] : memref<352x128xf32, #tpu.memory_space<vmem>>, vector<1x32xf32>
    %51 = vector.broadcast %50 : vector<1x32xf32> to vector<16x32xf32>
    %52 = arith.addf %49, %51 : vector<16x32xf32>
    %cst_37 = arith.constant 0.000000e+00 : f32
    %53 = vector.broadcast %cst_37 : f32 to vector<16x32xf32>
    %54 = arith.maximumf %52, %53 : vector<16x32xf32>
    %cst_38 = arith.constant dense<0.000000e+00> : vector<8x32xf32>
    %55 = tpu.matmul %2, %54, %cst_38 {dimension_numbers = #tpu.dot_dimension_numbers<[1], [0], [0], [1], [0, 0, 1, 1], [], []>} : vector<8x16xf32>, vector<16x32xf32>, vector<8x32xf32> -> vector<8x32xf32>
    %cst_39 = arith.constant dense<0.000000e+00> : vector<16x32xf32>
    %56 = tpu.matmul %3, %55, %cst_39 {dimension_numbers = #tpu.dot_dimension_numbers<[1], [0], [0], [1], [0, 0, 1, 1], [], []>} : vector<16x8xf32>, vector<8x32xf32>, vector<16x32xf32> -> vector<16x32xf32>
    %c304 = arith.constant 304 : index
    %c0_40 = arith.constant 0 : index
    %57 = vector.load %arg1[%c304, %c0_40] : memref<352x128xf32, #tpu.memory_space<vmem>>, vector<1x32xf32>
    %58 = vector.broadcast %57 : vector<1x32xf32> to vector<16x32xf32>
    %59 = arith.mulf %56, %58 : vector<16x32xf32>
    %60 = arith.subf %54, %59 : vector<16x32xf32>
    %61 = arith.mulf %60, %60 : vector<16x32xf32>
    %cst_41 = arith.constant dense<0.000000e+00> : vector<8x32xf32>
    %62 = tpu.matmul %2, %61, %cst_41 {dimension_numbers = #tpu.dot_dimension_numbers<[1], [0], [0], [1], [0, 0, 1, 1], [], []>} : vector<8x16xf32>, vector<16x32xf32>, vector<8x32xf32> -> vector<8x32xf32>
    %cst_42 = arith.constant dense<0.000000e+00> : vector<16x32xf32>
    %63 = tpu.matmul %3, %62, %cst_42 {dimension_numbers = #tpu.dot_dimension_numbers<[1], [0], [0], [1], [0, 0, 1, 1], [], []>} : vector<16x8xf32>, vector<8x32xf32>, vector<16x32xf32> -> vector<16x32xf32>
    %c288 = arith.constant 288 : index
    %c0_43 = arith.constant 0 : index
    %64 = vector.load %arg1[%c288, %c0_43] : memref<352x128xf32, #tpu.memory_space<vmem>>, vector<1x32xf32>
    %65 = vector.broadcast %64 : vector<1x32xf32> to vector<16x32xf32>
    %66 = arith.mulf %65, %60 : vector<16x32xf32>
    %cst_44 = arith.constant 9.99999974E-6 : f32
    %67 = vector.broadcast %cst_44 : f32 to vector<16x32xf32>
    %68 = arith.addf %63, %67 : vector<16x32xf32>
    %69 = math.rsqrt %68 : vector<16x32xf32>
    %70 = arith.mulf %66, %69 : vector<16x32xf32>
    %c296 = arith.constant 296 : index
    %c0_45 = arith.constant 0 : index
    %71 = vector.load %arg1[%c296, %c0_45] : memref<352x128xf32, #tpu.memory_space<vmem>>, vector<1x32xf32>
    %72 = vector.broadcast %71 : vector<1x32xf32> to vector<16x32xf32>
    %73 = arith.addf %70, %72 : vector<16x32xf32>
    %c312 = arith.constant 312 : index
    %c0_46 = arith.constant 0 : index
    %74 = vector.load %arg1[%c312, %c0_46] : memref<352x128xf32, #tpu.memory_space<vmem>>, vector<32x4xf32>
    %cst_47 = arith.constant dense<0.000000e+00> : vector<16x4xf32>
    %75 = tpu.matmul %73, %74, %cst_47 {dimension_numbers = #tpu.dot_dimension_numbers<[1], [0], [0], [1], [0, 0, 1, 1], [], []>} : vector<16x32xf32>, vector<32x4xf32>, vector<16x4xf32> -> vector<16x4xf32>
    %c344 = arith.constant 344 : index
    %c0_48 = arith.constant 0 : index
    %76 = vector.load %arg1[%c344, %c0_48] : memref<352x128xf32, #tpu.memory_space<vmem>>, vector<1x4xf32>
    %77 = vector.broadcast %76 : vector<1x4xf32> to vector<16x4xf32>
    %78 = arith.addf %75, %77 : vector<16x4xf32>
    %79 = vector.extract_strided_slice %78 {offsets = [0, 0], sizes = [16, 3], strides = [1, 1]} : vector<16x4xf32> to vector<16x3xf32>
    %80 = vector.extract_strided_slice %78 {offsets = [0, 3], sizes = [16, 1], strides = [1, 1]} : vector<16x4xf32> to vector<16x1xf32>
    %cst_49 = arith.constant dense<0.000000e+00> : vector<8x3xf32>
    %81 = tpu.matmul %4, %79, %cst_49 {dimension_numbers = #tpu.dot_dimension_numbers<[1], [0], [0], [1], [0, 0, 1, 1], [], []>} : vector<8x16xf32>, vector<16x3xf32>, vector<8x3xf32> -> vector<8x3xf32>
    %cst_50 = arith.constant 1.250000e-01 : f32
    %82 = vector.broadcast %cst_50 : f32 to vector<8x3xf32>
    %83 = arith.mulf %81, %82 : vector<8x3xf32>
    %cst_51 = arith.constant 0.714285731 : f32
    %84 = vector.broadcast %cst_51 : f32 to vector<8x3xf32>
    %85 = arith.mulf %83, %84 : vector<8x3xf32>
    %cst_52 = arith.constant dense<0xFF800000> : vector<8xf32>
    %86 = vector.multi_reduction <maximumf>, %85, %cst_52 [1] : vector<8x3xf32> to vector<8xf32>
    %87 = vector.shape_cast %86 : vector<8xf32> to vector<8x1xf32>
    %88 = vector.broadcast %87 : vector<8x1xf32> to vector<8x3xf32>
    %89 = arith.subf %85, %88 : vector<8x3xf32>
    %90 = math.exp %89 : vector<8x3xf32>
    %cst_53 = arith.constant dense<0.000000e+00> : vector<8xf32>
    %91 = vector.multi_reduction <add>, %90, %cst_53 [1] : vector<8x3xf32> to vector<8xf32>
    %92 = vector.shape_cast %91 : vector<8xf32> to vector<8x1xf32>
    %93 = math.log %92 : vector<8x1xf32>
    %94 = arith.addf %93, %87 : vector<8x1xf32>
    %95 = vector.broadcast %94 : vector<8x1xf32> to vector<8x3xf32>
    %96 = arith.subf %85, %95 : vector<8x3xf32>
    %97 = vector.broadcast %80 : vector<16x1xf32> to vector<16x8xf32>
    %98 = arith.mulf %97, %3 : vector<16x8xf32>
    %cst_54 = arith.constant dense<0.000000e+00> : vector<8x8xf32>
    %99 = tpu.matmul %4, %98, %cst_54 {dimension_numbers = #tpu.dot_dimension_numbers<[1], [0], [0], [1], [0, 0, 1, 1], [], []>} : vector<8x16xf32>, vector<16x8xf32>, vector<8x8xf32> -> vector<8x8xf32>
    %cst_55 = arith.constant 0.909090936 : f32
    %100 = vector.broadcast %cst_55 : f32 to vector<8x8xf32>
    %101 = arith.mulf %99, %100 : vector<8x8xf32>
    %cst_56 = arith.constant dense<0xFF800000> : vector<8xf32>
    %102 = vector.multi_reduction <maximumf>, %101, %cst_56 [1] : vector<8x8xf32> to vector<8xf32>
    %103 = vector.shape_cast %102 : vector<8xf32> to vector<8x1xf32>
    %104 = vector.broadcast %103 : vector<8x1xf32> to vector<8x8xf32>
    %105 = arith.subf %101, %104 : vector<8x8xf32>
    %106 = math.exp %105 : vector<8x8xf32>
    %cst_57 = arith.constant dense<0.000000e+00> : vector<8xf32>
    %107 = vector.multi_reduction <add>, %106, %cst_57 [1] : vector<8x8xf32> to vector<8xf32>
    %108 = vector.shape_cast %107 : vector<8xf32> to vector<8x1xf32>
    %109 = math.log %108 : vector<8x1xf32>
    %110 = arith.addf %109, %103 : vector<8x1xf32>
    %111 = vector.broadcast %110 : vector<8x1xf32> to vector<8x8xf32>
    %112 = arith.subf %101, %111 : vector<8x8xf32>
    %cst_58 = arith.constant dense<0.000000e+00> : vector<8x128xf32>
    %113 = tpu.matmul %112, %5, %cst_58 {dimension_numbers = #tpu.dot_dimension_numbers<[1], [0], [0], [1], [0, 0, 1, 1], [], []>} : vector<8x8xf32>, vector<8x128xf32>, vector<8x128xf32> -> vector<8x128xf32>
    %cst_59 = arith.constant dense<0.000000e+00> : vector<8x128xf32>
    %114 = tpu.matmul %96, %6, %cst_59 {dimension_numbers = #tpu.dot_dimension_numbers<[1], [0], [0], [1], [0, 0, 1, 1], [], []>} : vector<8x3xf32>, vector<3x128xf32>, vector<8x128xf32> -> vector<8x128xf32>
    %115 = arith.addf %113, %114 : vector<8x128xf32>
    %c0_60 = arith.constant 0 : index
    %c0_61 = arith.constant 0 : index
    %116 = vector.load %arg2[%c0_60, %c0_61] : memref<8x128xf32, #tpu.memory_space<vmem>>, vector<8x128xf32>
    tpu.vector_store %arg2[%c0_60, %c0_61], %115 {strides = array<i32>} : memref<8x128xf32, #tpu.memory_space<vmem>>, vector<8x128xf32>,
    return
  }
}

</mosaic_0001>

<bundles_post_ra>
// kernel: tpu_custom_call.1
= control target key start
LH: loop header
LB: loop body
LE: loop exit
PB: predicated region body
PF: predicated region fallthrough
CT: control target
= control target key end

     0   :  { %7 = vsyncpa [#allocation3], 0  ;;  %s954_s0 = inlined_call_operand.hbm [shape: f32[80,128], index: 0, kind: input, shape index: {}]   ;;  %s955_s1 = inlined_call_operand.hbm [shape: f32[352,128], index: 1, kind: input, shape index: {}]   ;;  %s956_s2 = inlined_call_operand.hbm [shape: f32[8,128], index: 2, kind: output, shape index: {}]  }
   0x1   :  { %8 = vsyncpa [#allocation6], 0 }
   0x2   :  { %9 = vsyncpa [#allocation4], 0  ;;  %s14_s11 = sshll.u32 %s954_s0, 4  ;;  %s870_s12 = smov [#allocation2]   ;;  %s15_s11 = int_to_ptr.hbm [resolvable:$true] %s14_s11 }
   0x3   :  { %s16_s13 = sshll.u32 %s870_s12, 4  ;;  %s27_s16 = sshll.u32 %s955_s1, 4  ;;  %s17_s13 = int_to_ptr.vmem [resolvable:$true] %s16_s13  ;;  %s28_s16 = int_to_ptr.hbm [resolvable:$true] %s27_s16 }
   0x4   :  { %s871_s17 = smov 128   ;;  %s872_s18 = smov 8  }
   0x5   :  { %22 = dma.hbm_to_vmem [thread:$0]  %s15_s11, 1280, %s17_s13, [#allocation3], %s871_s17, %s871_s17, %s872_s18  }
   0x6   :  { %s873_s19 = smov [#allocation5]  }
   0x7   :  { %s29_s20 = sshll.u32 %s873_s19, 4  ;;  %s30_s20 = int_to_ptr.vmem [resolvable:$true] %s29_s20 }
   0x8   :  { %35 = dma.hbm_to_vmem [thread:$0]  %s28_s16, 5632, %s30_s20, [#allocation6], %s871_s17, %s871_s17, %s872_s18  }
   0x9   :  { %864 = dma.done.wait [#allocation3], 1280  }
   0xa   :  { %865 = vsyncadd [#allocation3], 4294966016 }
   0xb   :  { %866 = dma.done.wait [#allocation6], 5632  }
   0xc   :  { %867 = vsyncadd [#allocation6], 4294961664  ;;  %v897_v0 = vld [vmem:[#allocation2 + $0x8] sm:$0xff]  ;;  %v899_v1 = vld [vmem:[#allocation2] sm:$0xff]  ;;  %vm54_vm0 = vcmask 130048   ;;  %vm94_vm1 = vcmask 1043456  }
   0xd   :  { %75 = vmatpush.msra.mxu0 %v897_v0  ;;  %v46_v2 = vld [vmem:[#allocation2 + $0x10] sm:$0xff]  ;;  %v47_v3 = vld [vmem:[#allocation2 + $0x18] sm:$0xff]  ;;  %vm87_vm2 = vcmask 31744   ;;  %v124_v9 = vld [vmem:[#allocation5 + $0x18] sm:$0xff]  ;;  %vm129_vm3 = vcmask 261120   ;;  %vm337_vm4 = vcmask 523264  }
   0xe   :  { %v84_v4 = vld [vmem:[#allocation5] sm:$0xf]  ;;  %v126_v5 = vld [vmem:[#allocation5 + $0x28] sm:$0xff]  ;;  %v123_v10 = vld [vmem:[#allocation5 + $0x10] sm:$0xff]  ;;  %vm428_vm5 = vcmask 64512   ;;  %vm599_vm12 = vcmask 23552  }
   0xf   :  { %76 = vmatpush.msra.mxu0 %v899_v1  ;;  %730 = vmatpush.msk.msra.mxu1 %vm94_vm1, %v84_v4  ;;  %v125_v8 = vld [vmem:[#allocation5 + $0x20] sm:$0xff]  ;;  %v164_v11 = vld [vmem:[#allocation5 + $0x50] sm:$0xff]  ;;  %v770_v12 = vld [vmem:[#allocation5 + $0x8] ss:$0 sm:$0xff]  ;;  %vm662_vm13 = vcmask 1042432   ;;  %s875_s0 = smov [#allocation7]  }
  0x10   :  { %728 = vmatmul.msk.f32.vlgmr.msra.gmra.mxu0 %vm54_vm0, %v46_v2  ;;  %148 = vmatpush.msra.mxu2 %v126_v5  ;;  %v163_v19 = vld [vmem:[#allocation5 + $0x48] sm:$0xff]  ;;  %v162_v20 = vld [vmem:[#allocation5 + $0x40] sm:$0xff]  ;;  %v161_v21 = vld [vmem:[#allocation5 + $0x38] sm:$0xff]  ;;  %s715_s1 = sshll.u32 %s875_s0, 4  ;;  %s717_s23 = sshll.u32 %s956_s2, 4  ;;  %s716_s1 = int_to_ptr.vmem [resolvable:$true] %s715_s1  ;;  %s718_s23 = int_to_ptr.hbm [resolvable:$true] %s717_s23 }
  0x11   :  { %v771_v22 = vld [vmem:[#allocation5 + $0x30] ss:$0 sm:$0xff]  ;;  %v190_v30 = vld [vmem:[#allocation5 + $0x68] sm:$0xff]  ;;  %v189_v31 = vld [vmem:[#allocation5 + $0x60] sm:$0xff] }
  0x12   :  { %149 = vmatpush.msra.mxu2 %v125_v8  ;;  %v191_v29 = vld [vmem:[#allocation5 + $0x70] sm:$0xff]  ;;  %v188_v32 = vld [vmem:[#allocation5 + $0x58] sm:$0xff]  ;;  %v226_v37 = vld [vmem:[#allocation5 + $0x88] sm:$0xff] }
  0x13   :  { %212 = vmatpush.msrb.mxu1 %v191_v29  ;;  %v228_v33 = vld [vmem:[#allocation5 + $0x98] sm:$0xff]  ;;  %v227_v36 = vld [vmem:[#allocation5 + $0x90] sm:$0xff]  ;;  %v225_v38 = vld [vmem:[#allocation5 + $0x80] sm:$0xff] }
  0x14   :  { %150 = vmatpush.msra.mxu2 %v124_v9  ;;  %249 = vmatpush.msrb.mxu0 %v228_v33  ;;  %v265_v39 = vld [vmem:[#allocation5 + $0xc0] sm:$0xff]  ;;  %v772_v40 = vld [vmem:[#allocation5 + $0x78] ss:$0 sm:$0xff]  ;;  %v263_v48 = vld [vmem:[#allocation5 + $0xb0] sm:$0xff] }
  0x15   :  { %213 = vmatpush.msrb.mxu1 %v190_v30  ;;  %v264_v47 = vld [vmem:[#allocation5 + $0xb8] sm:$0xff]  ;;  %v262_v49 = vld [vmem:[#allocation5 + $0xa8] sm:$0xff]  ;;  %v336_v50 = vld [vmem:[#allocation5 + $0x110] sm:$0xff] }
  0x16   :  { %151 = vmatpush.msra.mxu2 %v123_v10  ;;  %250 = vmatpush.msrb.mxu0 %v227_v36  ;;  %v335_v51 = vld [vmem:[#allocation5 + $0x108] sm:$0xff]  ;;  %v334_v52 = vld [vmem:[#allocation5 + $0x100] sm:$0xff]  ;;  %v333_v53 = vld [vmem:[#allocation5 + $0xf8] sm:$0xff] }
  0x17   :  { %214 = vmatpush.msrb.mxu1 %v189_v31  ;;  %v332_v54 = vld [vmem:[#allocation5 + $0xf0] sm:$0xff]  ;;  %v773_v55 = vld [vmem:[#allocation5 + $0xa0] ss:$0 sm:$0xff]  ;;  %v331_v62 = vld [vmem:[#allocation5 + $0xe8] sm:$0xff] }
  0x18   :  { %729 = vmatmul.msk.f32.gmra.mxu0 %vm54_vm0, %v47_v3  ;;  %313 = vmatpush.msrb.mxu2 %v164_v11  ;;  %v330_v63 = vld [vmem:[#allocation5 + $0xe0] sm:$0xff]  ;;  %v774_v5 = vld [vmem:[#allocation5 + $0xc8] ss:$0 sm:$0xff]  ;;  %v542_v36 = vld [vmem:[#allocation5 + $0x150] sm:$0xff] }
  0x19   :  { %215 = vmatpush.msrb.mxu1 %v188_v32  ;;  %251 = vmatpush.msrb.mxu0 %v226_v37  ;;  %v541_v37 = vld [vmem:[#allocation5 + $0x148] sm:$0xff] }
  0x1a   :  { %314 = vmatpush.msrb.mxu2 %v163_v19 }
  0x1b   :  { %252 = vmatpush.msrb.mxu0 %v225_v38  ;;  %v540_v38 = vld [vmem:[#allocation5 + $0x140] sm:$0xff] }
  0x1c   :  { %315 = vmatpush.msrb.mxu2 %v162_v20 }
  0x1e   :  { %316 = vmatpush.msrb.mxu2 %v161_v21 }
  0x8d   :  { %v78_v6 = vpop.f32.mrf.mxu0 }
  0x8e   :  { %731 = vmatmul.msk.f32.vlgmr.msra.gmra.mxu1 %vm87_vm2, %v78_v6 }
  0x8f   :  { %352 = vmatpush.msra.mxu1 %v336_v50 }
  0x91   :  { %353 = vmatpush.msra.mxu1 %v335_v51 }
  0x93   :  { %354 = vmatpush.msra.mxu1 %v334_v52 }
  0x95   :  { %v81_v7 = vpop.f32.mrf.mxu0  ;;  %355 = vmatpush.msra.mxu1 %v333_v53 }
  0x96   :  { %732 = vmatmul.msk.f32.gmra.mxu1 %vm87_vm2, %v81_v7 }
  0x97   :  { %356 = vmatpush.msra.mxu1 %v332_v54  ;;  %v778_v54 = vld [vmem:[#allocation5 + $0x128] ss:$0 sm:$0xff] }
  0x99   :  { %357 = vmatpush.msra.mxu1 %v331_v62 }
  0x9b   :  { %358 = vmatpush.msra.mxu1 %v330_v63 }
 0x10b   :  { %v115_v13 = vpop.f32.mrf.mxu1 }
 0x10c   :  { %v116_v14 = vadd.f32 %v770_v12, %v115_v13 }
 0x10e   :  { %v121_v15 = vmax.f32 %v116_v14, 0.0 }
 0x110   :  { %733 = vmatmul.msk.f32.vlgmr.msra.gmra.mxu2 %vm129_vm3, %v121_v15 }
 0x113   :  { %v118_v16 = vpop.f32.mrf.mxu1 }
 0x114   :  { %v119_v17 = vadd.f32 %v770_v12, %v118_v16 }
 0x116   :  { %v122_v18 = vmax.f32 %v119_v17, 0.0 }
 0x118   :  { %734 = vmatmul.msk.f32.gmra.mxu2 %vm129_vm3, %v122_v18 }
 0x193   :  { %v153_v23 = vpop.f32.mrf.mxu2 }
 0x194   :  { %v154_v24 = vadd.f32 %v771_v22, %v153_v23  ;;  %v926_v23 = vld [vmem:[#allocation2 + $0x28] sm:$0xff] }
 0x196   :  { %v159_v25 = vmax.f32 %v154_v24, 0.0 }
 0x198   :  { %743 = vmatmul.msk.f32.vlgmr.msrb.gmra.mxu2 %vm129_vm3, %v159_v25 }
 0x19b   :  { %v156_v26 = vpop.f32.mrf.mxu2 }
 0x19c   :  { %v157_v27 = vadd.f32 %v771_v22, %v156_v26  ;;  %v48_v22 = vld [vmem:[#allocation2 + $0x20] sm:$0xff] }
 0x19e   :  { %v160_v28 = vmax.f32 %v157_v27, 0.0  ;;  %v776_v27 = vld [vmem:[#allocation5 + $0x130] ss:$0 sm:$0xff] }
 0x1a0   :  { %179 = vmatpush.msra.mxu3 %v160_v28  ;;  %744 = vmatmul.msk.f32.gmra.mxu2 %vm129_vm3, %v160_v28 }
 0x1a2   :  { %180 = vmatpush.msra.mxu3 %v159_v25  ;;  %v930_v25 = vld [vmem:[#allocation2 + $0x30] sm:$0xff] }
 0x1a3   :  { %735 = vmatmul.msk.f32.vlgmr.msra.gmra.mxu3 %vm54_vm0, %v46_v2  ;;  %v329_v2 = vld [vmem:[#allocation5 + $0xd8] sm:$0xff] }
 0x1a4   :  { %284 = vmatpush.msrb.mxu3 %v265_v39  ;;  %359 = vmatpush.msra.mxu1 %v329_v2  ;;  %v539_v39 = vld [vmem:[#allocation5 + $0x138] sm:$0xff] }
 0x1a6   :  { %285 = vmatpush.msrb.mxu3 %v264_v47 }
 0x1a8   :  { %286 = vmatpush.msrb.mxu3 %v263_v48  ;;  %v777_v48 = vld [vmem:[#allocation5 + $0x120] ss:$0 sm:$0xff] }
 0x1aa   :  { %287 = vmatpush.msrb.mxu3 %v262_v49 }
 0x1ab   :  { %736 = vmatmul.msk.f32.gmra.mxu3 %vm54_vm0, %v47_v3  ;;  %v328_v3 = vld [vmem:[#allocation5 + $0xd0] sm:$0xf] }
 0x1ac   :  { %747 = vmatpush.msk.msra.mxu0 %vm94_vm1, %v328_v3 }
 0x21b   :  { %v318_v4 = vpop.f32.mrf.mxu2 }
 0x223   :  { %v321_v9 = vpop.f32.mrf.mxu2 }
 0x226   :  { %v182_v34 = vpop.f32.mrf.mxu3 }
 0x227   :  { %737 = vmatmul.msk.f32.vlgmr.msrb.gmra.mxu1 %vm129_vm3, %v182_v34 }
 0x22e   :  { %v185_v35 = vpop.f32.mrf.mxu3 }
 0x22f   :  { %738 = vmatmul.msk.f32.gmra.mxu1 %vm129_vm3, %v185_v35 }
 0x2a4   :  { %v217_v41 = vpop.f32.mrf.mxu1 }
 0x2a5   :  { %v218_v42 = vadd.f32 %v772_v40, %v217_v41 }
 0x2a7   :  { %v223_v43 = vmax.f32 %v218_v42, 0.0 }
 0x2a9   :  { %739 = vmatmul.msk.f32.vlgmr.msrb.gmra.mxu0 %vm129_vm3, %v223_v43 }
 0x2aa   :  { %563 = vmatpush.msrb.mxu0 %v542_v36  ;;  %v52_v36 = vld [vmem:[#allocation2 + $0x40] sm:$0xff] }
 0x2ac   :  { %v220_v44 = vpop.f32.mrf.mxu1  ;;  %564 = vmatpush.msrb.mxu0 %v541_v37 }
 0x2ad   :  { %v221_v45 = vadd.f32 %v772_v40, %v220_v44 }
 0x2ae   :  { %565 = vmatpush.msrb.mxu0 %v540_v38 }
 0x2af   :  { %v224_v46 = vmax.f32 %v221_v45, 0.0 }
 0x2b0   :  { %566 = vmatpush.msrb.mxu0 %v539_v39 }
 0x2b1   :  { %740 = vmatmul.msk.f32.gmra.mxu0 %vm129_vm3, %v224_v46 }
 0x2b9   :  { %748 = vmatmul.msk.f32.vlgmr.msra.gmra.mxu0 %vm87_vm2, %v899_v1  ;;  %v775_v1 = vld [vmem:[#allocation5 + $0x118] ss:$0 sm:$0xff] }
 0x2c1   :  { %749 = vmatmul.msk.f32.gmra.mxu0 %vm87_vm2, %v897_v0 }
 0x326   :  { %v254_v56 = vpop.f32.mrf.mxu0 }
 0x327   :  { %v255_v57 = vadd.f32 %v773_v55, %v254_v56 }
 0x329   :  { %v260_v58 = vmax.f32 %v255_v57, 0.0 }
 0x32b   :  { %741 = vmatmul.msk.f32.vlgmr.msrb.gmra.mxu3 %vm129_vm3, %v260_v58 }
 0x32e   :  { %v257_v59 = vpop.f32.mrf.mxu0 }
 0x32f   :  { %v258_v60 = vadd.f32 %v773_v55, %v257_v59 }
 0x331   :  { %v261_v61 = vmax.f32 %v258_v60, 0.0 }
 0x333   :  { %742 = vmatmul.msk.f32.gmra.mxu3 %vm129_vm3, %v261_v61 }
 0x336   :  { %v393_v13 = vpop.f32.mrf.mxu0 }
 0x33e   :  { %v396_v15 = vpop.f32.mrf.mxu0 }
 0x3ae   :  { %v289_v6 = vpop.f32.mrf.mxu3 }
 0x3af   :  { %v319_v7 = vadd.f32 %v318_v4, %v289_v6  ;;  %v874_v4 = vmov 3   ;;  %v779_v6 = vld [vmem:[#allocation5 + $0x158] ss:$0 sm:$0xff] }
 0x3b0   :  { %769 = vset.pattern.permute.xlu0 %v874_v4 }
 0x3b1   :  { %v326_v8 = vadd.f32 %v774_v5, %v319_v7 }
 0x3b3   :  { %745 = vmatmul.msk.f32.vlgmr.msra.gmra.mxu1 %vm337_vm4, %v326_v8 }
 0x3b6   :  { %v292_v10 = vpop.f32.mrf.mxu3 }
 0x3b7   :  { %v322_v11 = vadd.f32 %v321_v9, %v292_v10  ;;  %v51_v10 = vld [vmem:[#allocation2 + $0x38] sm:$0xff] }
 0x3b9   :  { %v327_v12 = vadd.f32 %v774_v5, %v322_v11 }
 0x3bb   :  { %746 = vmatmul.msk.f32.gmra.mxu1 %vm337_vm4, %v327_v12 }
 0x430   :  { %v361_v14 = vpop.f32.mrf.mxu1 }
 0x431   :  { %v394_v16 = vadd.f32 %v393_v13, %v361_v14 }
 0x433   :  { %v401_v0 = vadd.f32 %v775_v1, %v394_v16 }
 0x435   :  { %v403_v21 = vmax.f32 %v401_v0, 0.0 }
 0x438   :  { %v364_v17 = vpop.f32.mrf.mxu1 }
 0x439   :  { %v397_v18 = vadd.f32 %v396_v15, %v364_v17 }
 0x43b   :  { %v402_v19 = vadd.f32 %v775_v1, %v397_v18 }
 0x43d   :  { %v404_v20 = vmax.f32 %v402_v19, 0.0 }
 0x43f   :  { %422 = vmatpush.msra.mxu3 %v404_v20 }
 0x441   :  { %423 = vmatpush.msra.mxu3 %v403_v21 }
 0x442   :  { %750 = vmatmul.msk.f32.vlgmr.msra.gmra.mxu3 %vm54_vm0, %v48_v22 }
 0x4c5   :  { %v425_v24 = vpop.f32.mrf.mxu3 }
 0x4c6   :  { %450 = vmatpush.msra.mxu2 %v425_v24 }
 0x4c7   :  { %751 = vmatmul.msk.f32.vlgmr.msra.gmra.mxu2 %vm428_vm5, %v926_v23 }
 0x4cf   :  { %752 = vmatmul.msk.f32.gmra.mxu2 %vm428_vm5, %v930_v25 }
 0x54a   :  { %v452_v26 = vpop.f32.mrf.mxu2 }
 0x54b   :  { %v460_v28 = vmul.f32 %v776_v27, %v452_v26 }
 0x54d   :  { %v462_v31 = vsub.f32 %v403_v21, %v460_v28 }
 0x54f   :  { %v464_v34 = vmul.f32 %v462_v31, %v462_v31  ;;  %v488_v53 = vmul.f32 %v777_v48, %v462_v31 }
 0x552   :  { %v455_v29 = vpop.f32.mrf.mxu2 }
 0x553   :  { %v461_v30 = vmul.f32 %v776_v27, %v455_v29 }
 0x555   :  { %v463_v32 = vsub.f32 %v404_v20, %v461_v30 }
 0x557   :  { %v465_v33 = vmul.f32 %v463_v32, %v463_v32  ;;  %v489_v62 = vmul.f32 %v777_v48, %v463_v32 }
 0x559   :  { %480 = vmatpush.msrb.mxu3 %v465_v33 }
 0x55b   :  { %481 = vmatpush.msrb.mxu3 %v464_v34 }
 0x55c   :  { %753 = vmatmul.msk.f32.vlgmr.msrb.gmra.mxu3 %vm54_vm0, %v48_v22 }
 0x5df   :  { %v483_v35 = vpop.f32.mrf.mxu3 }
 0x5e0   :  { %505 = vmatpush.msrb.mxu1 %v483_v35 }
 0x5e1   :  { %754 = vmatmul.msk.f32.vlgmr.msrb.gmra.mxu1 %vm428_vm5, %v926_v23 }
 0x5e9   :  { %755 = vmatmul.msk.f32.gmra.mxu1 %vm428_vm5, %v930_v25 }
 0x65e   :  { %v507_v40 = vpop.f32.mrf.mxu1 }
 0x65f   :  { %v508_v41 = vadd.f32 1e-05, %v507_v40 }
 0x661   :  { %780 = vrsqrt.f32 %v508_v41  ;;  %vm519_vm7 = vweird.f32 %v508_v41 }
 0x666   :  { %v510_v42 = vpop.f32.mrf.mxu1 }
 0x667   :  { %v781_v43 = vpop.eup %780  ;;  %v511_v44 = vadd.f32 1e-05, %v510_v42 }
 0x668   :  { %v514_v45 = vmul.f32 %v781_v43, %v508_v41  ;;  %vm520_vm6 = vweird.f32 %v781_v43 }
 0x669   :  { %782 = vrsqrt.f32 %v511_v44  ;;  %vm521_vm8 = vmor %vm519_vm7, %vm520_vm6  ;;  %vm529_vm10 = vweird.f32 %v511_v44 }
 0x66a   :  { %v515_v46 = vmul.f32 %v781_v43, %v514_v45 }
 0x66c   :  { %v516_v47 = vmul.f32 0.5, %v515_v46 }
 0x66e   :  { %v517_v49 = vsub.f32 1.5, %v516_v47 }
 0x66f   :  { %v783_v50 = vpop.eup %782 }
 0x670   :  { %v518_v51 = vmul.f32 %v781_v43, %v517_v49  ;;  %v524_v52 = vmul.f32 %v783_v50, %v511_v44  ;;  %vm530_vm9 = vweird.f32 %v783_v50 }
 0x671   :  { %vm531_vm11 = vmor %vm529_vm10, %vm530_vm9 }
 0x672   :  { %v522_v55 = vsel %vm521_vm8, %v781_v43, %v518_v51  ;;  %v525_v56 = vmul.f32 %v783_v50, %v524_v52 }
 0x673   :  { %v533_v57 = vmul.f32 %v522_v55, %v488_v53 }
 0x674   :  { %v526_v58 = vmul.f32 0.5, %v525_v56 }
 0x675   :  { %v537_v59 = vadd.f32 %v778_v54, %v533_v57 }
 0x676   :  { %v527_v60 = vsub.f32 1.5, %v526_v58 }
 0x677   :  { %756 = vmatmul.msk.f32.vlgmr.msrb.gmra.mxu0 %vm129_vm3, %v537_v59 }
 0x678   :  { %v528_v61 = vmul.f32 %v783_v50, %v527_v60 }
 0x67a   :  { %v532_v63 = vsel %vm531_vm11, %v783_v50, %v528_v61 }
 0x67b   :  { %v534_v2 = vmul.f32 %v532_v63, %v489_v62 }
 0x67d   :  { %v538_v3 = vadd.f32 %v778_v54, %v534_v2 }
 0x67f   :  { %757 = vmatmul.msk.f32.gmra.mxu0 %vm129_vm3, %v538_v3 }
 0x6f4   :  { %v568_v5 = vpop.f32.mrf.mxu0 }
 0x6f5   :  { %v569_v9 = vadd.f32 %v779_v6, %v568_v5 }
 0x6fc   :  { %v571_v7 = vpop.f32.mrf.mxu0 }
 0x6fd   :  { %v572_v8 = vadd.f32 %v779_v6, %v571_v7 }
 0x6ff   :  { %620 = vperm.xlu0 %769, %v572_v8   ;;  %591 = vmatpush.msra.mxu3 %v572_v8 }
 0x701   :  { %592 = vmatpush.msra.mxu3 %v569_v9 }
 0x702   :  { %758 = vmatmul.msk.f32.vlgmr.msra.gmra.mxu3 %vm54_vm0, %v51_v10 }
 0x707   :  { %615 = vperm.xlu0 %769, %v569_v9  }
 0x771   :  { %v621_v11 = vpop.permute.xlu0 %620 }
 0x772   :  { %v624_v12 = vmul.f32 %v621_v11, %v930_v25  ;;  %v53_v25 = vld [vmem:[#allocation2 + $0x48] sm:$0x7] }
 0x773   :  { %760 = vmatpush.msk.msrb.mxu3 %vm662_vm13, %v53_v25 }
 0x774   :  { %639 = vmatpush.msrb.mxu2 %v624_v12 }
 0x779   :  { %v616_v13 = vpop.permute.xlu0 %615 }
 0x77a   :  { %v623_v14 = vmul.f32 %v616_v13, %v926_v23 }
 0x77c   :  { %640 = vmatpush.msrb.mxu2 %v623_v14 }
 0x77d   :  { %759 = vmatmul.msk.f32.vlgmr.msrb.gmra.mxu2 %vm54_vm0, %v51_v10 }
 0x77e   :  { %704 = vmatpush.msra.mxu2 %v52_v36 }
 0x785   :  { %v594_v15 = vpop.f32.mrf.mxu3 }
 0x786   :  { %v597_v16 = vmul.f32 0.125, %v594_v15 }
 0x788   :  { %v598_v1 = vmul.f32 0.71428573, %v597_v16 }
 0x78a   :  { %v600_v17 = vsel %vm599_vm12, %v598_v1, -inf }
 0x78b   :  { %601 = vmax.xlane.f32.xlu1 %v600_v17 }
 0x7fe   :  { %v602_v18 = vpop.xlane.xlu1 %601 }
 0x7ff   :  { %v603_v0 = vsub.f32 %v598_v1, %v602_v18 }
 0x800   :  { %v642_v19 = vpop.f32.mrf.mxu2 }
 0x801   :  { %v604_v20 = vmul.f32 1.442695, %v603_v0  ;;  %v645_v21 = vmul.f32 0.90909094, %v642_v19 }
 0x803   :  { %784 = vpow2.f32 %v604_v20  ;;  %v646_v22 = vsel %vm428_vm5, %v645_v21, -inf }
 0x804   :  { %647 = vmax.xlane.f32.xlu1 %v646_v22 }
 0x809   :  { %v785_v23 = vpop.eup %784 }
 0x80a   :  { %v606_v24 = vsel %vm599_vm12, %v785_v23, 0.0 }
 0x80b   :  { %607 = vadd.xlane.f32.xlu2 %v606_v24 }
 0x877   :  { %v648_v26 = vpop.xlane.xlu1 %647 }
 0x878   :  { %v649_v27 = vsub.f32 %v645_v21, %v648_v26 }
 0x87a   :  { %v650_v28 = vmul.f32 1.442695, %v649_v27 }
 0x87c   :  { %786 = vpow2.f32 %v650_v28 }
 0x87e   :  { %v608_v29 = vpop.xlane.xlu2 %607 }
 0x87f   :  { %788 = vlog2.f32 %v608_v29 }
 0x882   :  { %v787_v30 = vpop.eup %786 }
 0x883   :  { %v652_v31 = vsel %vm428_vm5, %v787_v30, 0.0 }
 0x884   :  { %653 = vadd.xlane.f32.xlu2 %v652_v31 }
 0x885   :  { %v789_v32 = vpop.eup %788 }
 0x886   :  { %v610_v33 = vmul.f32 0.6931472, %v789_v32 }
 0x888   :  { %v611_v34 = vadd.f32 %v610_v33, %v602_v18 }
 0x88a   :  { %v612_v35 = vsub.f32 %v598_v1, %v611_v34 }
 0x88c   :  { %761 = vmatmul.msk.f32.vlgmr.msrb.gmra.mxu3 %vm599_vm12, %v612_v35 }
 0x8f7   :  { %v654_v37 = vpop.xlane.xlu2 %653 }
 0x8f8   :  { %790 = vlog2.f32 %v654_v37 }
 0x8fe   :  { %v791_v38 = vpop.eup %790 }
 0x8ff   :  { %v656_v39 = vmul.f32 0.6931472, %v791_v38 }
 0x901   :  { %v657_v40 = vadd.f32 %v656_v39, %v648_v26 }
 0x903   :  { %v658_v41 = vsub.f32 %v645_v21, %v657_v40 }
 0x905   :  { %762 = vmatmul.msk.f32.vlgmr.msra.gmra.mxu2 %vm428_vm5, %v658_v41 }
 0x90f   :  { %v683_v42 = vpop.f32.mrf.mxu3 }
 0x988   :  { %v706_v43 = vpop.f32.mrf.mxu2 }
 0x989   :  { %v707_v44 = vadd.f32 %v706_v43, %v683_v42 }
 0x98b   :  { %709 = vst [vmem:[#allocation7] sm:$0xff] %v707_v44 }
 0x98c   :  { %720 = dma.vmem_to_hbm [thread:$0]  %s716_s1, 128, %s718_s23, [#allocation4]  }
 0x98d   :  { %868 = dma.done.wait [#allocation4], 128  }
 0x98e   :  { %869 = vsyncadd [#allocation4], 4294967168 }
 0x98f   :  { %725 = vsyncpa [#allocation3], 1 }
 0x990   :  { %726 = vsyncpa [#allocation6], 1 }
 0x991   :  { %727 = vsyncpa [#allocation4], 1 }

</bundles_post_ra>
